<compile_context>
chip_gen: v6e
topology: v6e:2x2x1
jax: 0.10.0
libtpu: 0.0.40
codegen_flags: <defaults>
</compile_context>

<pallas_src>
import functools

import jax
import jax.numpy as jnp
from jax import lax
from jax.experimental import pallas as pl
from jax.experimental.pallas import tpu as pltpu


def _darknet_block_kernel(x_ref, xu_ref, xd_ref, w1_ref, b1_ref, w2_ref, b2_ref,
                          o_ref, col_ref, *, TH, W):
    # x_ref  : (1, TH*W, Cin) f32   one row-strip of the image (pixels x channels)
    # xu_ref : (1, W, Cin)    f32   image row just above the strip (edge-clamped)
    # xd_ref : (1, W, Cin)    f32   image row just below the strip (edge-clamped)
    # w1_ref : (Cin, P)       bf16  1x1 conv weights, BN1 scale folded in
    # b1_ref : (1, P)         f32   folded BN1 bias
    # w2_ref : (3, 3P, 2P)    bf16  3x3 conv weights (BN2 scale folded), one
    #                               (3P, 2P) matrix per row offset dy
    # b2_ref : (1, 2P)        f32   folded BN2 bias
    # o_ref  : (1, TH*W, Cin) f32   Cin == 2P (residual add requires it)
    # col_ref: (TH+2, W, 3P)  bf16  im2col slab: col[r, w, dx*P:(dx+1)*P]
    #                               = zero-padded h1[strip_row r-1, w+dx-1, :]
    P = w1_ref.shape[1]
    t = pl.program_id(1)
    T = pl.num_programs(1)

    x = x_ref[0]                                   # (TH*W, Cin) f32
    w1 = w1_ref[...]                               # (Cin, P) bf16
    b1 = b1_ref[...]                               # (1, P) f32

    def conv1(v):                                  # (R, Cin) f32 -> (R, P) f32
        h = jnp.dot(v.astype(jnp.bfloat16), w1,
                    preferred_element_type=jnp.float32)
        h = h + b1
        return jnp.maximum(h, 0.1 * h)             # LeakyReLU(0.1)

    h1_mid = conv1(x).reshape(TH, W, P)

    # Halo rows: recompute the (cheap) 1x1 conv on the rows directly above /
    # below this strip; at the image boundary they become the conv2 zero pad.
    up_ok = (t > 0).astype(jnp.float32)
    dn_ok = (t < T - 1).astype(jnp.float32)
    h1_up = (conv1(xu_ref[0]) * up_ok).reshape(1, W, P)
    h1_dn = (conv1(xd_ref[0]) * dn_ok).reshape(1, W, P)

    # ---- build the bf16 im2col slab; dx in {0,1,2} encoded as channel bands ----
    def write_bands(row0, part):                   # part: (R, W, P) f32
        R = part.shape[0]
        pb = part.astype(jnp.bfloat16)
        rows = slice(row0, row0 + R)
        col_ref[rows, :, P:2 * P] = pb                           # dx = 1 (center)
        col_ref[rows, 1:W, 0:P] = pb[:, 0:W - 1, :]              # dx = 0 (reads w-1)
        col_ref[rows, 0:W - 1, 2 * P:3 * P] = pb[:, 1:W, :]      # dx = 2 (reads w+1)

    write_bands(0, h1_up)                          # padded / halo row above
    write_bands(1, h1_mid)                         # strip rows
    write_bands(TH + 1, h1_dn)                     # padded / halo row below
    # Border columns the shifted stores never touch: zero them (w-1 < 0, w+1 >= W).
    zc = jnp.zeros((TH + 2, 1, P), jnp.bfloat16)
    col_ref[:, 0:1, 0:P] = zc
    col_ref[:, W - 1:W, 2 * P:3 * P] = zc

    # ---- 3x3 conv as 3 matmuls with K = 3P (dy offsets = leading-dim slices) ----
    acc = jnp.dot(col_ref[0:TH].reshape(TH * W, 3 * P), w2_ref[0],
                  preferred_element_type=jnp.float32)
    acc = acc + jnp.dot(col_ref[1:TH + 1].reshape(TH * W, 3 * P), w2_ref[1],
                        preferred_element_type=jnp.float32)
    acc = acc + jnp.dot(col_ref[2:TH + 2].reshape(TH * W, 3 * P), w2_ref[2],
                        preferred_element_type=jnp.float32)

    y = acc + b2_ref[...]
    y = jnp.maximum(y, 0.1 * y)                    # LeakyReLU(0.1)

    o_ref[0] = (y + x).astype(o_ref.dtype)         # residual add (f32)


def _pick_row_tile(H, W, Cin, P, target_bytes=4 << 20):
    """Largest divisor of H whose per-strip working set is ~target_bytes."""
    per_row = W * (2 * Cin * 4 + 3 * P * 2)        # f32 in+out row + bf16 slab row
    th = int(max(1, min(H, target_bytes // max(per_row, 1))))
    while H % th:
        th -= 1
    return th


def darknet_basic_block_v3_nhwc(x_nhwc, w1, s1, b1, w2_hwio, s2, b2, *,
                                row_tile=None):
    """NHWC-native entry point (no layout transposes on the hot path).

    x_nhwc: (N, H, W, Cin) f32.  w1: (Cin, P).  w2_hwio: (3, 3, P, 2P).
    s*/b*: folded BatchNorm scale/bias.  Returns (N, H, W, Cin) f32.
    """
    N, H, W, Cin = x_nhwc.shape
    P = w1.shape[1]
    assert Cin == 2 * P, "residual add requires inplanes == 2 * planes"
    assert W % 8 == 0, "W must be a multiple of 8 (sublane tiling)"

    TH = _pick_row_tile(H, W, Cin, P) if row_tile is None else int(row_tile)
    assert H % TH == 0, "row_tile must divide H"
    T = H // TH

    # Fold BN scales into the conv weights; biases stay as f32 adds in-kernel.
    w1f = (w1 * s1).astype(jnp.bfloat16)                                   # (Cin, P)
    w2f = (w2_hwio * s2.reshape(1, 1, 1, 2 * P)) \
        .reshape(3, 3 * P, 2 * P).astype(jnp.bfloat16)                     # (3, 3P, 2P)
    b1f = b1.reshape(1, P).astype(jnp.float32)
    b2f = b2.reshape(1, 2 * P).astype(jnp.float32)

    x_flat = x_nhwc.reshape(N, H * W, Cin)

    kernel = functools.partial(_darknet_block_kernel, TH=TH, W=W)

    # VMEM budget: double-buffered strip in/out + halo rows + weights + slab.
    strip_bytes = TH * W * Cin * 4
    halo_bytes = W * Cin * 4
    wt_bytes = (w1f.size + w2f.size) * 2 + (b1f.size + b2f.size) * 4
    slab_bytes = (TH + 2) * W * 3 * P * 2
    est = 2 * (2 * strip_bytes + 2 * halo_bytes + wt_bytes) + slab_bytes
    vmem_limit = int(min(96 * (1 << 20), max(32 * (1 << 20), 2 * est)))

    flops = 2 * N * H * W * (Cin * P + 9 * P * 2 * P)
    bytes_accessed = 2 * N * H * W * Cin * 4 + N * T * 2 * W * Cin * 4 + wt_bytes

    out_flat = pl.pallas_call(
        kernel,
        out_shape=jax.ShapeDtypeStruct((N, H * W, Cin), x_nhwc.dtype),
        grid_spec=pltpu.PrefetchScalarGridSpec(
            num_scalar_prefetch=0,
            grid=(N, T),
            in_specs=[
                pl.BlockSpec((1, TH * W, Cin), lambda n, t: (n, t, 0)),
                pl.BlockSpec((1, W, Cin),
                             lambda n, t: (n, jnp.maximum(t * TH - 1, 0), 0)),
                pl.BlockSpec((1, W, Cin),
                             lambda n, t: (n, jnp.minimum((t + 1) * TH, H - 1), 0)),
                pl.BlockSpec((Cin, P), lambda n, t: (0, 0)),
                pl.BlockSpec((1, P), lambda n, t: (0, 0)),
                pl.BlockSpec((3, 3 * P, 2 * P), lambda n, t: (0, 0, 0)),
                pl.BlockSpec((1, 2 * P), lambda n, t: (0, 0)),
            ],
            out_specs=pl.BlockSpec((1, TH * W, Cin), lambda n, t: (n, t, 0)),
            scratch_shapes=[pltpu.VMEM((TH + 2, W, 3 * P), jnp.bfloat16)],
        ),
        compiler_params=pltpu.CompilerParams(
            dimension_semantics=("parallel", "parallel"),
            vmem_limit_bytes=vmem_limit),
        cost_estimate=pl.CostEstimate(
            flops=flops, transcendentals=0, bytes_accessed=bytes_accessed),
    )(x_flat, x_flat, x_flat, w1f, b1f, w2f, b2f)

    return out_flat.reshape(N, H, W, Cin)


def darknet_basic_block_v3(x_nchw, w1, s1, b1, w2_hwio, s2, b2, *, row_tile=None):
    """NCHW wrapper matching the PyTorch interface.  In a full network, keep
    activations NHWC and call darknet_basic_block_v3_nhwc directly to avoid
    these layout transposes on the hot path."""
    x_nhwc = jnp.transpose(x_nchw, (0, 2, 3, 1))
    out = darknet_basic_block_v3_nhwc(x_nhwc, w1, s1, b1, w2_hwio, s2, b2,
                                      row_tile=row_tile)
    return jnp.transpose(out, (0, 3, 1, 2))


def _reference(x_nchw, w1, s1, b1, w2_hwio, s2, b2):
    """Pure-JAX f32 reference (lax.conv) with the same folded-BN math."""
    x = jnp.transpose(x_nchw, (0, 2, 3, 1))       # NHWC
    dn = ("NHWC", "HWIO", "NHWC")
    w1_hwio = w1.reshape(1, 1, w1.shape[0], w1.shape[1])
    h1 = lax.conv_general_dilated(x, w1_hwio, (1, 1), "VALID",
                                  dimension_numbers=dn)
    h1 = h1 * s1 + b1
    h1 = jnp.where(h1 > 0, h1, 0.1 * h1)
    h2 = lax.conv_general_dilated(h1, w2_hwio, (1, 1), ((1, 1), (1, 1)),
                                  dimension_numbers=dn)
    h2 = h2 * s2 + b2
    h2 = jnp.where(h2 > 0, h2, 0.1 * h2)
    out = h2 + x
    return jnp.transpose(out, (0, 3, 1, 2))


if __name__ == "__main__":
    def run_case(N, Cin, H, W, row_tile, seed, tol):
        P = Cin // 2
        eps = 1e-5
        ks = jax.random.split(jax.random.PRNGKey(seed), 11)

        x = jax.random.normal(ks[0], (N, Cin, H, W), jnp.float32)
        # Conv weights (bias=False, matching PyTorch), ~unit-variance outputs.
        w1 = jax.random.normal(ks[1], (Cin, P), jnp.float32) / jnp.sqrt(
            jnp.float32(Cin))
        w2_hwio = jax.random.normal(ks[2], (3, 3, P, 2 * P), jnp.float32) / \
            jnp.sqrt(jnp.float32(9 * P))
        # Inference-mode BatchNorm parameters folded to scale/bias.
        g1 = 1.0 + 0.1 * jax.random.normal(ks[3], (P,), jnp.float32)
        be1 = 0.1 * jax.random.normal(ks[4], (P,), jnp.float32)
        m1 = 0.1 * jax.random.normal(ks[5], (P,), jnp.float32)
        v1 = jax.random.uniform(ks[6], (P,), jnp.float32, 0.5, 1.5)
        g2 = 1.0 + 0.1 * jax.random.normal(ks[7], (2 * P,), jnp.float32)
        be2 = 0.1 * jax.random.normal(ks[8], (2 * P,), jnp.float32)
        m2 = 0.1 * jax.random.normal(ks[9], (2 * P,), jnp.float32)
        v2 = jax.random.uniform(ks[10], (2 * P,), jnp.float32, 0.5, 1.5)

        s1 = (g1 / jnp.sqrt(v1 + eps)).reshape(1, P)
        b1 = (be1 - m1 * g1 / jnp.sqrt(v1 + eps)).reshape(1, P)
        s2 = (g2 / jnp.sqrt(v2 + eps)).reshape(1, 2 * P)
        b2 = (be2 - m2 * g2 / jnp.sqrt(v2 + eps)).reshape(1, 2 * P)

        out = darknet_basic_block_v3(x, w1, s1, b1, w2_hwio, s2, b2,
                                     row_tile=row_tile)
        out = jax.block_until_ready(out)
        ref = _reference(x, w1, s1, b1, w2_hwio, s2, b2)
        assert out.shape == (N, Cin, H, W)
        # bf16 matmul operands (f32 accumulation) vs f32 reference.
        err = float(jnp.max(jnp.abs(out - ref)))
        scale = float(jnp.max(jnp.abs(ref))) + 1.0
        assert err / scale < tol, (
            f"case N={N} Cin={Cin} H={H} W={W} TH={row_tile}: "
            f"rel err {err / scale:.5f}")

    # Toy spec shapes (inplanes=4, planes=2), 4 row strips: exercises the top /
    # interior / bottom halo paths with lane-misaligned channel bands.
    run_case(2, 4, 16, 16, 4, 0, 2e-2)
    # Same toy shapes with the auto row tile (single strip per image).
    run_case(2, 4, 16, 16, None, 0, 2e-2)
    # Realistic Darknet channel counts (planes=128 -> lane-aligned dx bands,
    # full MXU columns), 4 row strips.
    run_case(1, 256, 32, 32, 8, 0, 2e-2)

    print("KERNEL_OK")
</pallas_src>

<mosaic_0001>
module attributes {stable_mosaic.version = 11 : i64} {
  func.func @_darknet_block_kernel(%arg0: i32, %arg1: i32, %arg2: memref<1x64x4xf32, #tpu.memory_space<vmem>>, %arg3: memref<1x16x4xf32, #tpu.memory_space<vmem>>, %arg4: memref<1x16x4xf32, #tpu.memory_space<vmem>>, %arg5: memref<4x2xbf16, #tpu.memory_space<vmem>>, %arg6: memref<1x2xf32, #tpu.memory_space<vmem>>, %arg7: memref<3x6x4xbf16, #tpu.memory_space<vmem>>, %arg8: memref<1x4xf32, #tpu.memory_space<vmem>>, %arg9: memref<1x64x4xf32, #tpu.memory_space<vmem>>, %arg10: memref<6x16x6xbf16, #tpu.memory_space<vmem>>) attributes {dimension_semantics = [#tpu.dimension_semantics<parallel>, #tpu.dimension_semantics<parallel>], iteration_bounds = array<i64: 2, 4>, scalar_prefetch = 0 : i64, scratch_operands = 1 : i64, tpu.core_type = #tpu.core_type<tc>, window_params = [{transform_indices = @transform_0, window_bounds = array<i64: 1, 64, 4>}, {transform_indices = @transform_1, window_bounds = array<i64: 1, 16, 4>}, {transform_indices = @transform_2, window_bounds = array<i64: 1, 16, 4>}, {pipeline_mode = #tpu.pipeline_mode<synchronous>, transform_indices = @transform_3, window_bounds = array<i64: 4, 2>}, {pipeline_mode = #tpu.pipeline_mode<synchronous>, transform_indices = @transform_4, window_bounds = array<i64: 1, 2>}, {pipeline_mode = #tpu.pipeline_mode<synchronous>, transform_indices = @transform_5, window_bounds = array<i64: 3, 6, 4>}, {pipeline_mode = #tpu.pipeline_mode<synchronous>, transform_indices = @transform_6, window_bounds = array<i64: 1, 4>}, {transform_indices = @transform_7, window_bounds = array<i64: 1, 64, 4>}]} {
    %c0 = arith.constant 0 : index
    %c0_0 = arith.constant 0 : index
    %c0_1 = arith.constant 0 : index
    %0 = vector.load %arg2[%c0, %c0_0, %c0_1] : memref<1x64x4xf32, #tpu.memory_space<vmem>>, vector<1x64x4xf32>
    %1 = vector.shape_cast %0 : vector<1x64x4xf32> to vector<64x4xf32>
    %c0_2 = arith.constant 0 : index
    %c0_3 = arith.constant 0 : index
    %2 = vector.load %arg5[%c0_2, %c0_3] : memref<4x2xbf16, #tpu.memory_space<vmem>>, vector<4x2xbf16>
    %c0_4 = arith.constant 0 : index
    %c0_5 = arith.constant 0 : index
    %3 = vector.load %arg6[%c0_4, %c0_5] : memref<1x2xf32, #tpu.memory_space<vmem>>, vector<1x2xf32>
    %4 = arith.truncf %1 : vector<64x4xf32> to vector<64x4xbf16>
    %cst = arith.constant dense<0.000000e+00> : vector<64x2xf32>
    %5 = tpu.matmul %4, %2, %cst {dimension_numbers = #tpu.dot_dimension_numbers<[1], [0], [0], [1], [0, 0, 1, 1], [], []>} : vector<64x4xbf16>, vector<4x2xbf16>, vector<64x2xf32> -> vector<64x2xf32>
    %6 = vector.broadcast %3 : vector<1x2xf32> to vector<64x2xf32>
    %7 = arith.addf %5, %6 : vector<64x2xf32>
    %cst_6 = arith.constant 1.000000e-01 : f32
    %8 = vector.broadcast %cst_6 : f32 to vector<64x2xf32>
    %9 = arith.mulf %8, %7 : vector<64x2xf32>
    %10 = arith.maximumf %7, %9 : vector<64x2xf32>
    %11 = vector.shape_cast %10 : vector<64x2xf32> to vector<4x16x2xf32>
    %c0_i32 = arith.constant 0 : i32
    %12 = arith.cmpi sgt, %arg1, %c0_i32 : i32
    %13 = arith.extui %12 : i1 to i32
    %14 = arith.sitofp %13 : i32 to f32
    %c3_i32 = arith.constant 3 : i32
    %15 = arith.cmpi slt, %arg1, %c3_i32 : i32
    %16 = arith.extui %15 : i1 to i32
    %17 = arith.sitofp %16 : i32 to f32
    %c0_7 = arith.constant 0 : index
    %c0_8 = arith.constant 0 : index
    %c0_9 = arith.constant 0 : index
    %18 = vector.load %arg3[%c0_7, %c0_8, %c0_9] : memref<1x16x4xf32, #tpu.memory_space<vmem>>, vector<1x16x4xf32>
    %19 = vector.shape_cast %18 : vector<1x16x4xf32> to vector<16x4xf32>
    %20 = arith.truncf %19 : vector<16x4xf32> to vector<16x4xbf16>
    %cst_10 = arith.constant dense<0.000000e+00> : vector<16x2xf32>
    %21 = tpu.matmul %20, %2, %cst_10 {dimension_numbers = #tpu.dot_dimension_numbers<[1], [0], [0], [1], [0, 0, 1, 1], [], []>} : vector<16x4xbf16>, vector<4x2xbf16>, vector<16x2xf32> -> vector<16x2xf32>
    %22 = vector.broadcast %3 : vector<1x2xf32> to vector<16x2xf32>
    %23 = arith.addf %21, %22 : vector<16x2xf32>
    %cst_11 = arith.constant 1.000000e-01 : f32
    %24 = vector.broadcast %cst_11 : f32 to vector<16x2xf32>
    %25 = arith.mulf %24, %23 : vector<16x2xf32>
    %26 = arith.maximumf %23, %25 : vector<16x2xf32>
    %27 = vector.broadcast %14 : f32 to vector<16x2xf32>
    %28 = arith.mulf %26, %27 : vector<16x2xf32>
    %29 = vector.shape_cast %28 : vector<16x2xf32> to vector<1x16x2xf32>
    %c0_12 = arith.constant 0 : index
    %c0_13 = arith.constant 0 : index
    %c0_14 = arith.constant 0 : index
    %30 = vector.load %arg4[%c0_12, %c0_13, %c0_14] : memref<1x16x4xf32, #tpu.memory_space<vmem>>, vector<1x16x4xf32>
    %31 = vector.shape_cast %30 : vector<1x16x4xf32> to vector<16x4xf32>
    %32 = arith.truncf %31 : vector<16x4xf32> to vector<16x4xbf16>
    %cst_15 = arith.constant dense<0.000000e+00> : vector<16x2xf32>
    %33 = tpu.matmul %32, %2, %cst_15 {dimension_numbers = #tpu.dot_dimension_numbers<[1], [0], [0], [1], [0, 0, 1, 1], [], []>} : vector<16x4xbf16>, vector<4x2xbf16>, vector<16x2xf32> -> vector<16x2xf32>
    %34 = vector.broadcast %3 : vector<1x2xf32> to vector<16x2xf32>
    %35 = arith.addf %33, %34 : vector<16x2xf32>
    %cst_16 = arith.constant 1.000000e-01 : f32
    %36 = vector.broadcast %cst_16 : f32 to vector<16x2xf32>
    %37 = arith.mulf %36, %35 : vector<16x2xf32>
    %38 = arith.maximumf %35, %37 : vector<16x2xf32>
    %39 = vector.broadcast %17 : f32 to vector<16x2xf32>
    %40 = arith.mulf %38, %39 : vector<16x2xf32>
    %41 = vector.shape_cast %40 : vector<16x2xf32> to vector<1x16x2xf32>
    %42 = arith.truncf %29 : vector<1x16x2xf32> to vector<1x16x2xbf16>
    %c0_17 = arith.constant 0 : index
    %c0_18 = arith.constant 0 : index
    %c2 = arith.constant 2 : index
    %43 = vector.load %arg10[%c0_17, %c0_18, %c2] : memref<6x16x6xbf16, #tpu.memory_space<vmem>>, vector<1x16x2xbf16>
    tpu.vector_store %arg10[%c0_17, %c0_18, %c2], %42 {strides = array<i32>} : memref<6x16x6xbf16, #tpu.memory_space<vmem>>, vector<1x16x2xbf16>,
    %44 = vector.extract_strided_slice %42 {offsets = [0, 0, 0], sizes = [1, 15, 2], strides = [1, 1, 1]} : vector<1x16x2xbf16> to vector<1x15x2xbf16>
    %c0_19 = arith.constant 0 : index
    %c1 = arith.constant 1 : index
    %c0_20 = arith.constant 0 : index
    %45 = vector.load %arg10[%c0_19, %c1, %c0_20] : memref<6x16x6xbf16, #tpu.memory_space<vmem>>, vector<1x15x2xbf16>
    tpu.vector_store %arg10[%c0_19, %c1, %c0_20], %44 {strides = array<i32>} : memref<6x16x6xbf16, #tpu.memory_space<vmem>>, vector<1x15x2xbf16>,
    %46 = vector.extract_strided_slice %42 {offsets = [0, 1, 0], sizes = [1, 15, 2], strides = [1, 1, 1]} : vector<1x16x2xbf16> to vector<1x15x2xbf16>
    %c0_21 = arith.constant 0 : index
    %c0_22 = arith.constant 0 : index
    %c4 = arith.constant 4 : index
    %47 = vector.load %arg10[%c0_21, %c0_22, %c4] : memref<6x16x6xbf16, #tpu.memory_space<vmem>>, vector<1x15x2xbf16>
    tpu.vector_store %arg10[%c0_21, %c0_22, %c4], %46 {strides = array<i32>} : memref<6x16x6xbf16, #tpu.memory_space<vmem>>, vector<1x15x2xbf16>,
    %48 = arith.truncf %11 : vector<4x16x2xf32> to vector<4x16x2xbf16>
    %c1_23 = arith.constant 1 : index
    %c0_24 = arith.constant 0 : index
    %c2_25 = arith.constant 2 : index
    %49 = vector.load %arg10[%c1_23, %c0_24, %c2_25] : memref<6x16x6xbf16, #tpu.memory_space<vmem>>, vector<4x16x2xbf16>
    tpu.vector_store %arg10[%c1_23, %c0_24, %c2_25], %48 {strides = array<i32>} : memref<6x16x6xbf16, #tpu.memory_space<vmem>>, vector<4x16x2xbf16>,
    %50 = vector.extract_strided_slice %48 {offsets = [0, 0, 0], sizes = [4, 15, 2], strides = [1, 1, 1]} : vector<4x16x2xbf16> to vector<4x15x2xbf16>
    %c1_26 = arith.constant 1 : index
    %c1_27 = arith.constant 1 : index
    %c0_28 = arith.constant 0 : index
    %51 = vector.load %arg10[%c1_26, %c1_27, %c0_28] : memref<6x16x6xbf16, #tpu.memory_space<vmem>>, vector<4x15x2xbf16>
    tpu.vector_store %arg10[%c1_26, %c1_27, %c0_28], %50 {strides = array<i32>} : memref<6x16x6xbf16, #tpu.memory_space<vmem>>, vector<4x15x2xbf16>,
    %52 = vector.extract_strided_slice %48 {offsets = [0, 1, 0], sizes = [4, 15, 2], strides = [1, 1, 1]} : vector<4x16x2xbf16> to vector<4x15x2xbf16>
    %c1_29 = arith.constant 1 : index
    %c0_30 = arith.constant 0 : index
    %c4_31 = arith.constant 4 : index
    %53 = vector.load %arg10[%c1_29, %c0_30, %c4_31] : memref<6x16x6xbf16, #tpu.memory_space<vmem>>, vector<4x15x2xbf16>
    tpu.vector_store %arg10[%c1_29, %c0_30, %c4_31], %52 {strides = array<i32>} : memref<6x16x6xbf16, #tpu.memory_space<vmem>>, vector<4x15x2xbf16>,
    %54 = arith.truncf %41 : vector<1x16x2xf32> to vector<1x16x2xbf16>
    %c5 = arith.constant 5 : index
    %c0_32 = arith.constant 0 : index
    %c2_33 = arith.constant 2 : index
    %55 = vector.load %arg10[%c5, %c0_32, %c2_33] : memref<6x16x6xbf16, #tpu.memory_space<vmem>>, vector<1x16x2xbf16>
    tpu.vector_store %arg10[%c5, %c0_32, %c2_33], %54 {strides = array<i32>} : memref<6x16x6xbf16, #tpu.memory_space<vmem>>, vector<1x16x2xbf16>,
    %56 = vector.extract_strided_slice %54 {offsets = [0, 0, 0], sizes = [1, 15, 2], strides = [1, 1, 1]} : vector<1x16x2xbf16> to vector<1x15x2xbf16>
    %c5_34 = arith.constant 5 : index
    %c1_35 = arith.constant 1 : index
    %c0_36 = arith.constant 0 : index
    %57 = vector.load %arg10[%c5_34, %c1_35, %c0_36] : memref<6x16x6xbf16, #tpu.memory_space<vmem>>, vector<1x15x2xbf16>
    tpu.vector_store %arg10[%c5_34, %c1_35, %c0_36], %56 {strides = array<i32>} : memref<6x16x6xbf16, #tpu.memory_space<vmem>>, vector<1x15x2xbf16>,
    %58 = vector.extract_strided_slice %54 {offsets = [0, 1, 0], sizes = [1, 15, 2], strides = [1, 1, 1]} : vector<1x16x2xbf16> to vector<1x15x2xbf16>
    %c5_37 = arith.constant 5 : index
    %c0_38 = arith.constant 0 : index
    %c4_39 = arith.constant 4 : index
    %59 = vector.load %arg10[%c5_37, %c0_38, %c4_39] : memref<6x16x6xbf16, #tpu.memory_space<vmem>>, vector<1x15x2xbf16>
    tpu.vector_store %arg10[%c5_37, %c0_38, %c4_39], %58 {strides = array<i32>} : memref<6x16x6xbf16, #tpu.memory_space<vmem>>, vector<1x15x2xbf16>,
    %cst_40 = arith.constant 0.000000e+00 : bf16
    %60 = vector.broadcast %cst_40 : bf16 to vector<6x1x2xbf16>
    %c0_41 = arith.constant 0 : index
    %c0_42 = arith.constant 0 : index
    %c0_43 = arith.constant 0 : index
    %61 = vector.load %arg10[%c0_41, %c0_42, %c0_43] : memref<6x16x6xbf16, #tpu.memory_space<vmem>>, vector<6x1x2xbf16>
    tpu.vector_store %arg10[%c0_41, %c0_42, %c0_43], %60 {strides = array<i32>} : memref<6x16x6xbf16, #tpu.memory_space<vmem>>, vector<6x1x2xbf16>,
    %c0_44 = arith.constant 0 : index
    %c15 = arith.constant 15 : index
    %c4_45 = arith.constant 4 : index
    %62 = vector.load %arg10[%c0_44, %c15, %c4_45] : memref<6x16x6xbf16, #tpu.memory_space<vmem>>, vector<6x1x2xbf16>
    tpu.vector_store %arg10[%c0_44, %c15, %c4_45], %60 {strides = array<i32>} : memref<6x16x6xbf16, #tpu.memory_space<vmem>>, vector<6x1x2xbf16>,
    %c0_46 = arith.constant 0 : index
    %c0_47 = arith.constant 0 : index
    %c0_48 = arith.constant 0 : index
    %63 = vector.load %arg10[%c0_46, %c0_47, %c0_48] : memref<6x16x6xbf16, #tpu.memory_space<vmem>>, vector<4x16x6xbf16>
    %64 = vector.shape_cast %63 : vector<4x16x6xbf16> to vector<64x6xbf16>
    %c0_49 = arith.constant 0 : index
    %c0_50 = arith.constant 0 : index
    %c0_51 = arith.constant 0 : index
    %65 = vector.load %arg7[%c0_49, %c0_50, %c0_51] : memref<3x6x4xbf16, #tpu.memory_space<vmem>>, vector<1x6x4xbf16>
    %66 = vector.shape_cast %65 : vector<1x6x4xbf16> to vector<6x4xbf16>
    %cst_52 = arith.constant dense<0.000000e+00> : vector<64x4xf32>
    %67 = tpu.matmul %64, %66, %cst_52 {dimension_numbers = #tpu.dot_dimension_numbers<[1], [0], [0], [1], [0, 0, 1, 1], [], []>} : vector<64x6xbf16>, vector<6x4xbf16>, vector<64x4xf32> -> vector<64x4xf32>
    %c1_53 = arith.constant 1 : index
    %c0_54 = arith.constant 0 : index
    %c0_55 = arith.constant 0 : index
    %68 = vector.load %arg10[%c1_53, %c0_54, %c0_55] : memref<6x16x6xbf16, #tpu.memory_space<vmem>>, vector<4x16x6xbf16>
    %69 = vector.shape_cast %68 : vector<4x16x6xbf16> to vector<64x6xbf16>
    %c1_56 = arith.constant 1 : index
    %c0_57 = arith.constant 0 : index
    %c0_58 = arith.constant 0 : index
    %70 = vector.load %arg7[%c1_56, %c0_57, %c0_58] : memref<3x6x4xbf16, #tpu.memory_space<vmem>>, vector<1x6x4xbf16>
    %71 = vector.shape_cast %70 : vector<1x6x4xbf16> to vector<6x4xbf16>
    %cst_59 = arith.constant dense<0.000000e+00> : vector<64x4xf32>
    %72 = tpu.matmul %69, %71, %cst_59 {dimension_numbers = #tpu.dot_dimension_numbers<[1], [0], [0], [1], [0, 0, 1, 1], [], []>} : vector<64x6xbf16>, vector<6x4xbf16>, vector<64x4xf32> -> vector<64x4xf32>
    %73 = arith.addf %67, %72 : vector<64x4xf32>
    %c2_60 = arith.constant 2 : index
    %c0_61 = arith.constant 0 : index
    %c0_62 = arith.constant 0 : index
    %74 = vector.load %arg10[%c2_60, %c0_61, %c0_62] : memref<6x16x6xbf16, #tpu.memory_space<vmem>>, vector<4x16x6xbf16>
    %75 = vector.shape_cast %74 : vector<4x16x6xbf16> to vector<64x6xbf16>
    %c2_63 = arith.constant 2 : index
    %c0_64 = arith.constant 0 : index
    %c0_65 = arith.constant 0 : index
    %76 = vector.load %arg7[%c2_63, %c0_64, %c0_65] : memref<3x6x4xbf16, #tpu.memory_space<vmem>>, vector<1x6x4xbf16>
    %77 = vector.shape_cast %76 : vector<1x6x4xbf16> to vector<6x4xbf16>
    %cst_66 = arith.constant dense<0.000000e+00> : vector<64x4xf32>
    %78 = tpu.matmul %75, %77, %cst_66 {dimension_numbers = #tpu.dot_dimension_numbers<[1], [0], [0], [1], [0, 0, 1, 1], [], []>} : vector<64x6xbf16>, vector<6x4xbf16>, vector<64x4xf32> -> vector<64x4xf32>
    %79 = arith.addf %73, %78 : vector<64x4xf32>
    %c0_67 = arith.constant 0 : index
    %c0_68 = arith.constant 0 : index
    %80 = vector.load %arg8[%c0_67, %c0_68] : memref<1x4xf32, #tpu.memory_space<vmem>>, vector<1x4xf32>
    %81 = vector.broadcast %80 : vector<1x4xf32> to vector<64x4xf32>
    %82 = arith.addf %79, %81 : vector<64x4xf32>
    %cst_69 = arith.constant 1.000000e-01 : f32
    %83 = vector.broadcast %cst_69 : f32 to vector<64x4xf32>
    %84 = arith.mulf %83, %82 : vector<64x4xf32>
    %85 = arith.maximumf %82, %84 : vector<64x4xf32>
    %86 = arith.addf %85, %1 : vector<64x4xf32>
    %c0_70 = arith.constant 0 : index
    %c0_71 = arith.constant 0 : index
    %c0_72 = arith.constant 0 : index
    %87 = vector.load %arg9[%c0_70, %c0_71, %c0_72] : memref<1x64x4xf32, #tpu.memory_space<vmem>>, vector<1x64x4xf32>
    %88 = vector.shape_cast %87 : vector<1x64x4xf32> to vector<64x4xf32>
    %89 = vector.shape_cast %86 : vector<64x4xf32> to vector<1x64x4xf32>
    tpu.vector_store %arg9[%c0_70, %c0_71, %c0_72], %89 {strides = array<i32>} : memref<1x64x4xf32, #tpu.memory_space<vmem>>, vector<1x64x4xf32>,
    return
  }
  func.func @transform_0(%arg0: i32, %arg1: i32) -> (i32, i32, i32) {
    %c0_i32 = arith.constant 0 : i32
    %c0_i32_0 = arith.constant 0 : i32
    return %arg0, %arg1, %c0_i32 : i32, i32, i32
  }
  func.func @transform_1(%arg0: i32, %arg1: i32) -> (i32, i32, i32) {
    %c4_i32 = arith.constant 4 : i32
    %0 = arith.muli %arg1, %c4_i32 : i32
    %c1_i32 = arith.constant 1 : i32
    %1 = arith.subi %0, %c1_i32 : i32
    %c0_i32 = arith.constant 0 : i32
    %2 = arith.maxsi %1, %c0_i32 : i32
    %c0_i32_0 = arith.constant 0 : i32
    %c0_i32_1 = arith.constant 0 : i32
    return %arg0, %2, %c0_i32_0 : i32, i32, i32
  }
  func.func @transform_2(%arg0: i32, %arg1: i32) -> (i32, i32, i32) {
    %c1_i32 = arith.constant 1 : i32
    %0 = arith.addi %arg1, %c1_i32 : i32
    %c4_i32 = arith.constant 4 : i32
    %1 = arith.muli %0, %c4_i32 : i32
    %c15_i32 = arith.constant 15 : i32
    %2 = arith.minsi %1, %c15_i32 : i32
    %c0_i32 = arith.constant 0 : i32
    %c0_i32_0 = arith.constant 0 : i32
    return %arg0, %2, %c0_i32 : i32, i32, i32
  }
  func.func @transform_3(%arg0: i32, %arg1: i32) -> (i32, i32) {
    %c0_i32 = arith.constant 0 : i32
    %c0_i32_0 = arith.constant 0 : i32
    %c0_i32_1 = arith.constant 0 : i32
    return %c0_i32, %c0_i32_0 : i32, i32
  }
  func.func @transform_4(%arg0: i32, %arg1: i32) -> (i32, i32) {
    %c0_i32 = arith.constant 0 : i32
    %c0_i32_0 = arith.constant 0 : i32
    %c0_i32_1 = arith.constant 0 : i32
    return %c0_i32, %c0_i32_0 : i32, i32
  }
  func.func @transform_5(%arg0: i32, %arg1: i32) -> (i32, i32, i32) {
    %c0_i32 = arith.constant 0 : i32
    %c0_i32_0 = arith.constant 0 : i32
    %c0_i32_1 = arith.constant 0 : i32
    %c0_i32_2 = arith.constant 0 : i32
    return %c0_i32, %c0_i32_0, %c0_i32_1 : i32, i32, i32
  }
  func.func @transform_6(%arg0: i32, %arg1: i32) -> (i32, i32) {
    %c0_i32 = arith.constant 0 : i32
    %c0_i32_0 = arith.constant 0 : i32
    %c0_i32_1 = arith.constant 0 : i32
    return %c0_i32, %c0_i32_0 : i32, i32
  }
  func.func @transform_7(%arg0: i32, %arg1: i32) -> (i32, i32, i32) {
    %c0_i32 = arith.constant 0 : i32
    %c0_i32_0 = arith.constant 0 : i32
    return %arg0, %arg1, %c0_i32 : i32, i32, i32
  }
}

</mosaic_0001>

<bundles_post_ra>
// kernel: tpu_custom_call.1
= control target key start
LH: loop header
LB: loop body
LE: loop exit
PB: predicated region body
PF: predicated region fallthrough
CT: control target
= control target key end

     0   :  { %s1899_s24 = smov 0   ;;  %s1901_s25 = smov 0   ;;  %s2395_s0 = inlined_call_operand.vmem [shape: f32[2,256,4], index: 0, kind: input, shape index: {}]   ;;  %s2396_s1 = inlined_call_operand.vmem [shape: f32[2,256,4], index: 1, kind: input, shape index: {}]   ;;  %s2397_s2 = inlined_call_operand.vmem [shape: f32[2,256,4], index: 2, kind: input, shape index: {}]   ;;  %s2398_s3 = inlined_call_operand.vmem [shape: bf16[4,2], index: 3, kind: input, shape index: {}]   ;;  %s2399_s4 = inlined_call_operand.vmem [shape: f32[1,2], index: 4, kind: input, shape index: {}]   ;;  %s2400_s5 = inlined_call_operand.vmem [shape: bf16[3,6,4], index: 5, kind: input, shape index: {}]   ;;  %s2401_s6 = inlined_call_operand.vmem [shape: f32[1,4], index: 6, kind: input, shape index: {}]   ;;  %s2402_s7 = inlined_call_operand.vmem [shape: f32[2,256,4], index: 7, kind: output, shape index: {}]  }
   0x1   :  { %s1903_s26 = smov 0   ;;  %s1905_s27 = smov 0  }
   0x2   :  { %s1907_s28 = smov 0  }
   0x3 LB: > { %s26_s29 = sadd.s32 1, %s1845_s26  ;;  %s29_s30 = sadd.s32 1, %s1849_s27  ;;  %s1853_s28 = sphi %s1907_s28, %s17_s28   ;;  %s1849_s27 = sphi %s1905_s27, %s2418_s27   ;;  %s1845_s26 = sphi %s1903_s26, %s2417_s26   ;;  %s1841_s25 = sphi %s1901_s25, %s2416_s25   ;;  %s1837_s24 = sphi %s1899_s24, %s2415_s24  }
   0x4   : > { %p27_p0 = scmp.ge.s32.totalorder %s26_s29, 4  ;;  %p1589_p1 = scmp.ge.s32.totalorder %s1853_s28, 1 }
   0x5   : > { %p324_p2 = scmp.lt.s32.totalorder %s1853_s28, 9 }
   0x6   : > { %s2420_s29 = smov (%p27_p0, %s26_s29), 0  ;;  %s2422_s30 = smov (!%p27_p0, %s29_s30), %s1849_s27 }
   0x7   : > { %p325_p3 = pnand %p1589_p1, %p324_p2  ;;  %p31_p4 = scmp.ge.s32.totalorder %s2422_s30, 2 }
   0x8   : > { %s1590_s10 = sshll.u32 (!%p325_p3), %s1837_s24, 3  ;;  %p391_p5 = scmp.lt.s32.totalorder (!%p325_p3), %s1841_s25, 1 }
   0x9   : > { %s2424_s30 = smov (%p31_p4, %s2422_s30), 0  ;;  %328 = sbr.rel (%p325_p3) target bundleno = 617 (0x269), region = 48 }
   0xa   : > { %p393_p6 = scmp.lt.s32.totalorder (!%p325_p3), %s1590_s10, 31  ;;  %s1593_s11 = sshll.u32 (!%p325_p3), %s1837_s24, 2 }
   0xb   : > { %s1594_s13 = sadd.s32 (!%p325_p3), 4294967295, %s1593_s11  ;;  %s1658_s16 = sadd.s32 (!%p325_p3), 4, %s1593_s11 }
   0xc   : > { %p402_p7 = scmp.gt.s32.totalorder (!%p325_p3), %s1594_s13, 0  ;;  %p420_p8 = scmp.lt.s32.totalorder (!%p325_p3), %s1658_s16, 15 }
   0xd   : > { %p565_p11 = scmp.gt.s32.totalorder (!%p325_p3), %s1837_s24, 0  ;;  %p568_p12 = scmp.lt.s32.totalorder (!%p325_p3), %s1837_s24, 3 }
   0xe   : > { %v455_v0 = vld [vmem:[%s2398_s3] sm:$0x3]  ;;  %vm480_vm0 = vcmask 1041408   ;;  %s2426_s25 = smov (!%p391_p5, %s1841_s25), 1  ;;  %s2428_s10 = smov (!%p393_p6, %s1590_s10), 31  ;;  %v1855_v2 = vmov 0.0  }
   0xf   : > { %1749 = vmatprep.subr.msk.bf16.mxu0 %vm480_vm0, %v455_v0  ;;  %1750 = vmatprep.subr.msk.bf16.mxu1 %vm480_vm0, %v455_v0  ;;  %v482_v1 = vsel %vm480_vm0, %v455_v0, 0  ;;  %s1936_s12 = sshll.u32 %s2426_s25, 5  ;;  %vm467_vm1 = vcmask 31744   ;;  %s2430_s13 = smov (!%p402_p7, %s1594_s13), 0  ;;  %vm1856_vm2 = vmmov 0   ;;  %vm1118_vm9 = vcmask 1042432  }
  0x10   : > { %1696 = vmatpush3.bf16.msra.mxu0 %v482_v1  ;;  %1748 = vmatpush3.bf16.msra.mxu1 %v482_v1  ;;  %s396_s14 = sadd.s32 %s1936_s12, %s2428_s10  ;;  %s1595_s20 = sshll.u32 %s2430_s13, 1  ;;  %v1983_v21 = vld [vmem:[%s2399_s4] ss:$0 sm:$0xff]  ;;  %vm723_vm3 = vsmask.f32 3328  ;;  %vm691_vm10 = vcmask 27664  }
  0x11   : > { %1705 = vmatprep.subr.bf16.mxu1 %v1855_v2  ;;  %s1939_s15 = sshll.u32 %s396_s14, 3  ;;  %p407_p9 = scmp.lt.s32.totalorder %s1595_s20, 31  ;;  %vm724_vm4 = vsmask.f32 7440  ;;  %vm694_vm6 = vsmask.f32 256 }
  0x12   : > { %s1945_s19 = scalar_lea.vmem %s2395_s0, %s1939_s15  ;;  %s2432_s16 = smov (!%p420_p8, %s1658_s16), 15  ;;  %vm2073_vm5 = vmor %vm723_vm3, %vm724_vm4  ;;  %vm695_vm7 = vsmask.f32 4368  ;;  %vm715_vm11 = vcmask 11264   ;;  %vm716_vm12 = vsmask.f32 7938 }
  0x13   : > { %v1948_v3 = vld [vmem:[%s1945_s19] sm:$0xff]  ;;  %v448_v4 = vld [vmem:[%s1945_s19 + $0x8] sm:$0xff]  ;;  %v1955_v8 = vld [vmem:[%s1945_s19 + $0x10] sm:$0xff]  ;;  %s2434_s20 = smov (!%p407_p9, %s1595_s20), 31  ;;  %s1599_s21 = sshll.u32 %s2432_s16, 1  ;;  %vm741_vm14 = vcmask 44064  }
  0x14   : > { %v451_v5 = vld [vmem:[%s1945_s19 + $0x20] sm:$0xff]  ;;  %v457_v6 = vpack.c.bf16 %v448_v4, %v1948_v3  ;;  %v452_v7 = vld [vmem:[%s1945_s19 + $0x28] sm:$0xff]  ;;  %v1958_v9 = vld [vmem:[%s1945_s19 + $0x18] sm:$0xff]  ;;  %s410_s22 = sadd.s32 %s1936_s12, %s2434_s20  ;;  %p425_p10 = scmp.lt.s32.totalorder %s1599_s21, 31  ;;  %vm1025_vm15 = vcmask 8192  }
  0x15   : > { %v459_v10 = vpack.c.bf16 %v452_v7, %v451_v5  ;;  %v458_v11 = vpack.c.bf16 %v1958_v9, %v1955_v8  ;;  %v453_v12 = vld [vmem:[%s1945_s19 + $0x30] sm:$0xff]  ;;  %v454_v13 = vld [vmem:[%s1945_s19 + $0x38] sm:$0xff]  ;;  %s1597_s23 = sshll.u32 %s410_s22, 3  ;;  %s1857_s22 = smov 2   ;;  %vm2146_vm8 = vmor %vm694_vm6, %vm695_vm7  ;;  %vm1046_vm4 = vsmask.f32 7950 }
  0x16   : > { %1697 = vmatprep.mubr.msk.bf16.mxu0 %vm467_vm1, %v457_v6  ;;  %v460_v14 = vpack.c.bf16 %v454_v13, %v453_v12  ;;  %s412_s9 = scalar_lea.vmem %s2396_s1, %s1597_s23  ;;  %s2436_s21 = smov (!%p425_p10, %s1599_s21), 31  ;;  %vm2236_vm13 = vmand %vm715_vm11, %vm716_vm12 }
  0x17   : > { %1701 = vmatprep.mubr.msk.bf16.mxu1 %vm467_vm1, %v459_v10  ;;  %1698 = vmatmul.mubr.msk.bf16.vlgmr.msra.gmra.mxu0 %vm467_vm1, %v458_v11  ;;  %v571_v15 = vld [vmem:[%s412_s9] sm:$0xff]  ;;  %v572_v16 = vld [vmem:[%s412_s9 + $0x8] sm:$0xff]  ;;  %s428_s10 = sadd.s32 %s1936_s12, %s2436_s21  ;;  %s1858_s23 = smov 4   ;;  %vm2267_vm0 = vmand %vm741_vm14, %vm723_vm3  ;;  %vm1045_vm3 = vcmask 44067  }
  0x18   : > { %1702 = vmatmul.mubr.msk.bf16.vlgmr.msra.gmra.mxu1 %vm467_vm1, %v460_v14  ;;  %v573_v17 = vpack.c.bf16 %v572_v16, %v571_v15  ;;  %s1601_s11 = sshll.u32 %s428_s10, 3 }
  0x19   : > { %1706 = vmatpush3.bf16.msra.mxu1 %v482_v1  ;;  %1707 = vmatprep.mubr.msk.bf16.mxu1 %vm1856_vm2, %v1855_v2  ;;  %s430_s16 = scalar_lea.vmem %s2397_s2, %s1601_s11 }
  0x1a   : > { %1711 = vmatprep.subr.bf16.mxu1 %v1855_v2  ;;  %v625_v18 = vld [vmem:[%s430_s16] sm:$0xff]  ;;  %v626_v19 = vld [vmem:[%s430_s16 + $0x8] sm:$0xff]  ;;  %s1989_s12 = scalar_select %p565_p11, 1, 0 }
  0x1b   : > { %v627_v20 = vpack.c.bf16 %v626_v19, %v625_v18  ;;  %s1993_s20 = scalar_select %p568_p12, 1, 0 }
  0x1c   : > { %s567_s24 = scvt.s32.f32 %s1989_s12  ;;  %s2354_s12 = scalar_lea.vmem %s2402_s7, %s1939_s15 }
  0x1d   : > { %s570_s21 = scvt.s32.f32 %s1993_s20 }
  0x1e   : > { %v2015_v56 = vstv %s567_s24 }
  0x1f   : > { %v2023_v63 = vstv %s570_s21 }
  0x20   : > { %1708 = vmatmul.mubr.msk.bf16.vlgmr.msra.gmra.mxu1 %vm467_vm1, %v573_v17 }
  0x21   : > { %1712 = vmatpush3.bf16.msra.mxu1 %v482_v1  ;;  %1713 = vmatprep.mubr.msk.bf16.mxu1 %vm1856_vm2, %v1855_v2  ;;  %vm2273_vm2 = vmand %vm1025_vm15, %vm694_vm6  ;;  %vm1105_vm6 = vcmask 48128  }
  0x28   : > { %1714 = vmatmul.mubr.msk.bf16.vlgmr.msra.gmra.mxu1 %vm467_vm1, %v627_v20 }
  0xd7   : > { %v1699_v22 = vpop.f32.mrf.mxu0 }
  0xd8   : > { %v527_v23 = vadd.f32 %v1699_v22, %v1983_v21  ;;  %v1703_v24 = vpop.f32.mrf.mxu1 }
  0xd9   : > { %v543_v25 = vadd.f32 %v1703_v24, %v1983_v21  ;;  %v518_v26 = vpop.f32.mrf.mxu0 }
  0xda   : > { %v551_v27 = vmul.f32 0.1, %v527_v23  ;;  %v519_v28 = vadd.f32 %v1983_v21, %v518_v26  ;;  %v534_v29 = vpop.f32.mrf.mxu1 }
  0xdb   : > { %v555_v30 = vmul.f32 0.1, %v543_v25  ;;  %v535_v31 = vadd.f32 %v1983_v21, %v534_v29  ;;  %v1700_v32 = vpop.f32.mrf.mxu0 }
  0xdc   : > { %v559_v33 = vmax.f32 %v527_v23, %v551_v27  ;;  %v549_v34 = vmul.f32 0.1, %v519_v28  ;;  %v530_v35 = vadd.f32 %v1700_v32, %v1983_v21  ;;  %v1704_v36 = vpop.f32.mrf.mxu1 }
  0xdd   : > { %v563_v37 = vmax.f32 %v543_v25, %v555_v30  ;;  %v553_v38 = vmul.f32 0.1, %v535_v31  ;;  %v546_v39 = vadd.f32 %v1704_v36, %v1983_v21  ;;  %v521_v40 = vpop.f32.mrf.mxu0 }
  0xde   : > { %v1998_v41 = vpack.c.bf16 %v559_v33, %v559_v33  ;;  %v557_v42 = vmax.f32 %v519_v28, %v549_v34  ;;  %v552_v43 = vmul.f32 0.1, %v530_v35  ;;  %v537_v44 = vpop.f32.mrf.mxu1  ;;  %v522_v51 = vadd.f32 %v1983_v21, %v521_v40 }
  0xdf   : > { %v2000_v45 = vpack.c.bf16 %v563_v37, %v563_v37  ;;  %v561_v46 = vmax.f32 %v535_v31, %v553_v38  ;;  %v556_v47 = vmul.f32 0.1, %v546_v39  ;;  %v538_v55 = vadd.f32 %v1983_v21, %v537_v44 }
  0xe0   : > { %v822_v48 = vshrl.u32 %v1998_v41, 16  ;;  %v2004_v49 = vpack.c.bf16 %v557_v42, %v557_v42  ;;  %v560_v50 = vmax.f32 %v530_v35, %v552_v43  ;;  %v611_v52 = vpop.f32.mrf.mxu1  ;;  %776 = vrot.lane.b32.xlu1 %v1998_v41, %s1857_s22  ;;  %v825_v61 = vshll.u32 %v1998_v41, 16 }
  0xe1   : > { %v854_v53 = vshrl.u32 %v2000_v45, 16  ;;  %v2010_v54 = vpack.c.bf16 %v561_v46, %v561_v46  ;;  %784 = vrot.lane.b32.xlu0 %v2000_v45, %s1857_s22  ;;  %v564_v58 = vmax.f32 %v546_v39, %v556_v47  ;;  %v857_v62 = vshll.u32 %v2000_v45, 16 }
  0xe2   : > { %v2017_v57 = vpack.c.bf16 %v560_v50, %v560_v50  ;;  %v1709_v59 = vpop.f32.mrf.mxu1  ;;  %v2019_v60 = vrot.slane %v822_v48, 7  ;;  %v806_v0 = vshrl.u32 %v2004_v49, 16  ;;  %v809_v1 = vshll.u32 %v2004_v49, 16 }
  0xe3   : > { %v550_v4 = vmul.f32 0.1, %v522_v51  ;;  %v2032_v6 = vrot.slane %v854_v53, 7  ;;  %v838_v7 = vshrl.u32 %v2010_v54, 16  ;;  %v554_v11 = vmul.f32 0.1, %v538_v55 }
  0xe4   : > { %v833_v2 = vshll.u32 %v2017_v57, 16  ;;  %v614_v5 = vpop.f32.mrf.mxu1  ;;  %778 = vrot.lane.b32.xlu1 %v2017_v57, %s1857_s22  ;;  %v830_v10 = vshrl.u32 %v2017_v57, 16  ;;  %v2038_v12 = vpack.c.bf16 %v564_v58, %v564_v58  ;;  %v612_v14 = vadd.f32 %v1983_v21, %v611_v52 }
  0xe5   : > { %772 = vrot.lane.b32.xlu0 %v2004_v49, %s1857_s22  ;;  %v558_v13 = vmax.f32 %v522_v51, %v550_v4  ;;  %v2042_v15 = vadd.f32 %v1983_v21, %v614_v5  ;;  %v841_v17 = vshll.u32 %v2010_v54, 16  ;;  %v562_v18 = vmax.f32 %v538_v55, %v554_v11 }
  0xe6   : > { %v1710_v16 = vpop.f32.mrf.mxu1  ;;  %v902_v19 = vrot.slane %v822_v48, 4  ;;  %v903_v20 = vrot.slane %v825_v61, 5  ;;  %v618_v23 = vmul.f32 0.1, %v612_v14  ;;  %v906_v25 = vrot.slane %v833_v2, 5 }
  0xe7   : > { %v2047_v22 = vpack.c.bf16 %v558_v13, %v558_v13  ;;  %v619_v24 = vmul.f32 0.1, %v2042_v15  ;;  %v2054_v27 = vpack.c.bf16 %v562_v18, %v562_v18  ;;  %v908_v30 = vrot.slane %v830_v10, 4 }
  0xe8   : > { %786 = vrot.lane.b32.xlu1 %v2038_v12, %s1857_s22  ;;  %v665_v26 = vpop.f32.mrf.mxu1  ;;  %v904_v28 = vor.u32 %v903_v20, %v902_v19  ;;  %v2063_v31 = vrot.slane %v806_v0, 7  ;;  %v2065_v32 = vrot.slane %v838_v7, 7  ;;  %v620_v34 = vmax.f32 %v612_v14, %v618_v23 }
  0xe9   : > { %780 = vrot.lane.b32.xlu0 %v2010_v54, %s1857_s22  ;;  %v2059_v29 = vadd.f32 %v1983_v21, %v665_v26  ;;  %v817_v33 = vshll.u32 %v2047_v22, 16  ;;  %v862_v36 = vshrl.u32 %v2038_v12, 16  ;;  %v865_v37 = vshll.u32 %v2038_v12, 16 }
  0xea   : > { %v1715_v35 = vpop.f32.mrf.mxu1  ;;  %v814_v38 = vshrl.u32 %v2047_v22, 16  ;;  %v905_v40 = vrot.slane %v904_v28, 4  ;;  %v623_v42 = vmul.f32 %v2015_v56, %v620_v34  ;;  %v909_v44 = vor.u32 %v908_v30, %v906_v25 }
  0xeb   : > { %v672_v43 = vmul.f32 0.1, %v2059_v29  ;;  %v893_v46 = vrot.slane %v806_v0, 4  ;;  %v846_v48 = vshrl.u32 %v2054_v27, 16  ;;  %v849_v50 = vshll.u32 %v2054_v27, 16 }
  0xec   : > { %782 = vrot.lane.b32.xlu1 %v2054_v27, %s1857_s22  ;;  %v668_v47 = vpop.f32.mrf.mxu1  ;;  %v621_v51 = vmax.f32 %v2042_v15, %v619_v24  ;;  %v894_v52 = vrot.slane %v809_v1, 5  ;;  %v907_v55 = vsel %vm2073_vm5, %v905_v40, %v906_v25  ;;  %v2090_v58 = vpack.c.bf16 %v623_v42, %v623_v42 }
  0xed   : > { %774 = vrot.lane.b32.xlu0 %v2047_v22, %s1857_s22  ;;  %v897_v59 = vrot.slane %v817_v33, 5  ;;  %v669_v0 = vadd.f32 %v1983_v21, %v668_v47  ;;  %v899_v11 = vrot.slane %v814_v38, 4  ;;  %v911_v13 = vrot.slane %v838_v7, 4 }
  0xee   : > { %v1716_v4 = vpop.f32.mrf.mxu1  ;;  %v895_v5 = vor.u32 %v894_v52, %v893_v46  ;;  %v912_v14 = vrot.slane %v841_v17, 5  ;;  %v698_v15 = vshrl.u32 %v2090_v58, 16  ;;  %v674_v16 = vmax.f32 %v2059_v29, %v672_v43 }
  0xef   : > { %v910_v18 = vrot.slane %v909_v44, 4  ;;  %v673_v19 = vmul.f32 0.1, %v669_v0  ;;  %v701_v21 = vshll.u32 %v2090_v58, 16  ;;  %v900_v20 = vor.u32 %v899_v11, %v897_v59 }
  0xf0   : > { %933 = vrot.lane.b32.xlu1 %v907_v55, %s1858_s23  ;;  %v896_v7 = vrot.slane %v895_v5, 4  ;;  %v913_v23 = vor.u32 %v912_v14, %v911_v13  ;;  %v915_v24 = vrot.slane %v849_v50, 5  ;;  %v924_v25 = vrot.slane %v865_v37, 5 }
  0xf1   : > { %685 = vrot.lane.b32.xlu0 %v2090_v58, %s1857_s22  ;;  %v926_v26 = vrot.slane %v862_v36, 4  ;;  %v624_v28 = vmul.f32 %v2015_v56, %v621_v51  ;;  %v675_v30 = vmax.f32 %v669_v0, %v673_v19  ;;  %v917_v35 = vrot.slane %v846_v48, 4 }
  0xf2   : > { %v898_v29 = vsel %vm2073_vm5, %v896_v7, %v897_v59  ;;  %v914_v34 = vrot.slane %v913_v23, 4  ;;  %v832_v40 = vrot.slane %v830_v10, 7  ;;  %v920_v43 = vrot.slane %v854_v53, 4 }
  0xf3   : > { %v2115_v42 = vpack.c.bf16 %v624_v28, %v624_v28  ;;  %v921_v56 = vrot.slane %v857_v62, 5  ;;  %v864_v44 = vrot.slane %v862_v36, 7  ;;  %v901_v46 = vrot.slane %v900_v20, 4 }
  0xf4   : > { %929 = vrot.lane.b32.xlu1 %v898_v29, %s1858_s23  ;;  %v726_v47 = vrot.slane %v698_v15, 4  ;;  %v727_v51 = vrot.slane %v701_v21, 5  ;;  %v927_v52 = vor.u32 %v926_v26, %v924_v25  ;;  %v916_v53 = vsel %vm2073_vm5, %v914_v34, %v915_v24 }
  0xf5   : > { %935 = vrot.lane.b32.xlu0 %v910_v18, %s1858_s23  ;;  %v922_v10 = vor.u32 %v921_v56, %v920_v43  ;;  %v706_v55 = vshrl.u32 %v2115_v42, 16  ;;  %v709_v59 = vshll.u32 %v2115_v42, 16  ;;  %v918_v0 = vor.u32 %v917_v35, %v915_v24 }
  0xf6   : > { %v677_v4 = vmul.f32 %v2023_v63, %v674_v16  ;;  %v678_v36 = vmul.f32 %v2023_v63, %v675_v30  ;;  %v816_v5 = vrot.slane %v814_v38, 7  ;;  %v728_v14 = vor.u32 %v727_v51, %v726_v47 }
  0xf7   : > { %v923_v11 = vrot.slane %v922_v10, 4  ;;  %v730_v13 = vrot.slane %v709_v59, 5  ;;  %v732_v18 = vrot.slane %v706_v55, 4  ;;  %v2135_v20 = vor.u32 %v857_v62, %v2032_v6 }
  0xf8   : > { %937 = vrot.lane.b32.xlu1 %v916_v53, %s1858_s23  ;;  %v1669_v19 = vpack.c.bf16 %v677_v4, %v677_v4  ;;  %v1670_v7 = vpack.c.bf16 %v678_v36, %v678_v36  ;;  %v848_v16 = vrot.slane %v846_v48, 7  ;;  %v700_v63 = vrot.slane %v698_v15, 7  ;;  %v1641_v36 = vld [vmem:[%s2400_s5 + $0x8] sm:$0x7] }
  0xf9   : > { %931 = vrot.lane.b32.xlu0 %v901_v46, %s1858_s23  ;;  %v928_v38 = vrot.slane %v927_v52, 4  ;;  %v2142_v23 = vor.u32 %v825_v61, %v2019_v60  ;;  %v919_v24 = vrot.slane %v918_v0, 4  ;;  %v708_v26 = vrot.slane %v706_v55, 7 }
  0xfa   : > { %v985_v28 = vshrl.u32 %v1669_v19, 16  ;;  %v988_v29 = vshll.u32 %v1669_v19, 16  ;;  %v729_v62 = vrot.slane %v728_v14, 4  ;;  %v828_v48 = vrot.slane %v2019_v60, 4 }
  0xfb   : > { %v835_v41 = vor.u32 %v833_v2, %v832_v40  ;;  %v2158_v61 = vor.u32 %v809_v1, %v2063_v31  ;;  %v925_v15 = vsel %vm2073_vm5, %v923_v11, %v924_v25  ;;  %v733_v30 = vor.u32 %v732_v18, %v730_v13 }
  0xfc   : > { %687 = vrot.lane.b32.xlu1 %v2115_v42, %s1857_s22  ;;  %v993_v34 = vshrl.u32 %v1670_v7, 16  ;;  %v996_v35 = vshll.u32 %v1670_v7, 16  ;;  %v1006_v42 = vrot.slane %v985_v28, 4  ;;  %v1007_v43 = vrot.slane %v988_v29, 5 }
  0xfd   : > { %943 = vrot.lane.b32.xlu0 %v928_v38, %s1858_s23  ;;  %v836_v60 = vsel %vm2146_vm8, %v828_v48, %v835_v41  ;;  %v860_v57 = vrot.slane %v2032_v6, 4  ;;  %v867_v49 = vor.u32 %v865_v37, %v864_v44  ;;  %v2171_v1 = vor.u32 %v841_v17, %v2065_v32 }
  0xfe   : > { %v844_v2 = vrot.slane %v2065_v32, 4  ;;  %v851_v25 = vor.u32 %v849_v50, %v848_v16  ;;  %v731_v40 = vsel %vm2073_vm5, %v729_v62, %v730_v13  ;;  %v987_v56 = vrot.slane %v985_v28, 7 }
  0xff   : > { %v819_v6 = vor.u32 %v817_v33, %v816_v5  ;;  %v812_v12 = vrot.slane %v2063_v31, 4  ;;  %v995_v54 = vrot.slane %v993_v34, 7  ;;  %v868_v17 = vsel %vm2146_vm8, %v860_v57, %v867_v49  ;;  %v1624_v33 = vld [vmem:[%s2400_s5 + $0x4] sm:$0x7]  ;;  %v1074_v5 = vld [vmem:[%s2400_s5] sm:$0x7] }
 0x100   : > { %941 = vrot.lane.b32.xlu1 %v925_v15, %s1858_s23  ;;  %v2187_v27 = vsel %vm2146_vm8, %v844_v2, %v851_v25  ;;  %v2191_v32 = vor.u32 %v701_v21, %v700_v63  ;;  %v734_v37 = vrot.slane %v733_v30, 4  ;;  %v1010_v50 = vrot.slane %v996_v35, 5  ;;  %1751 = vmatprep.subr.msk.bf16.mxu0 %vm1118_vm9, %v1624_v33 }
 0x101   : > { %939 = vrot.lane.b32.xlu0 %v919_v24, %s1858_s23  ;;  %v1012_v22 = vrot.slane %v993_v34, 4  ;;  %v2195_v31 = vsel %vm2146_vm8, %v812_v12, %v819_v6  ;;  %v1008_v44 = vor.u32 %v1007_v43, %v1006_v42  ;;  %v704_v46 = vrot.slane %v700_v63, 4  ;;  %1752 = vmatprep.subr.msk.bf16.mxu1 %vm1118_vm9, %v1074_v5 }
 0x102   : > { %v711_v47 = vor.u32 %v709_v59, %v708_v26  ;;  %v1120_v58 = vsel %vm1118_vm9, %v1624_v33, 0  ;;  %v2203_v21 = vor.u32 %v988_v29, %v987_v56  ;;  %v991_v51 = vrot.slane %v987_v56, 4 }
 0x103   : > { %1718 = vmatpush3.bf16.msra.mxu0 %v1120_v58  ;;  %v998_v10 = vor.u32 %v996_v35, %v995_v54  ;;  %v1013_v55 = vor.u32 %v1012_v22, %v1010_v50  ;;  %v1009_v59 = vrot.slane %v1008_v44, 4  ;;  %v2228_v11 = vsel %vm1118_vm9, %v1641_v36, 0 }
 0x104   : > { %735 = vrot.lane.b32.xlu1 %v731_v40, %s1858_s23  ;;  %v2208_v52 = vsel %vm2146_vm8, %v704_v46, %v711_v47  ;;  %1753 = vmatprep.subr.msk.bf16.mxu0 %vm1118_vm9, %v1641_v36  ;;  %v1220_v39 = vsel %vm1118_vm9, %v1074_v5, 0 }
 0x105   : > { %737 = vrot.lane.b32.xlu0 %v734_v37, %s1858_s23  ;;  %v2212_v53 = vsel %vm2146_vm8, %v991_v51, %v998_v10  ;;  %v1014_v0 = vrot.slane %v1013_v55, 4  ;;  %v1011_v4 = vsel %vm2073_vm5, %v1009_v59, %v1010_v50  ;;  %1728 = vmatpush3.bf16.msra.mxu1 %v1220_v39  ;;  %vm2287_vm5 = vmand %vm1045_vm3, %vm1046_vm4 }
 0x108   : > { %977 = vrot.lane.b32.xlu1 %v1670_v7, %s1857_s22 }
 0x109   : > { %975 = vrot.lane.b32.xlu0 %v1669_v19, %s1857_s22 }
 0x10c   : > { %1015 = vrot.lane.b32.xlu1 %v1011_v4, %s1858_s23 }
 0x10d   : > { %1017 = vrot.lane.b32.xlu0 %v1014_v0, %s1858_s23 }
 0x152   : > { %v777_v13 = vpop.permute.xlu1 %776 }
 0x153   : > { %v785_v14 = vpop.permute.xlu0 %784  ;;  %799 = vst.msk [vmem:[#allocation2 + $0x10] sm:$0xf] %vm691_vm10, %v777_v13 }
 0x154   : > { %803 = vst.msk [vmem:[#allocation2 + $0x20] sm:$0xf] %vm691_vm10, %v785_v14 }
 0x156   : > { %v779_v18 = vpop.permute.xlu1 %778 }
 0x157   : > { %800 = vst.msk [vmem:[#allocation2 + $0x14] sm:$0xf] %vm691_vm10, %v779_v18  ;;  %v773_v19 = vpop.permute.xlu0 %772 }
 0x158   : > { %884 = vst.msk [vmem:[#allocation2 + $0x14] sm:$0xf] %vm715_vm11, %v836_v60 }
 0x159   : > { %797 = vst.msk [vmem:[#allocation2 + $0x8] sm:$0xf] %vm691_vm10, %v773_v19 }
 0x15a   : > { %v881_v16 = vld [vmem:[#allocation2 + $0x10] sm:$0xf]  ;;  %v787_v63 = vpop.permute.xlu1 %786 }
 0x15b   : > { %v889_v38 = vld [vmem:[#allocation2 + $0x20] sm:$0xf]  ;;  %v882_v24 = vsel %vm2236_vm13, %v2142_v23, %v881_v16  ;;  %804 = vst.msk [vmem:[#allocation2 + $0x24] sm:$0xf] %vm691_vm10, %v787_v63  ;;  %v781_v26 = vpop.permute.xlu0 %780 }
 0x15c   : > { %v890_v28 = vsel %vm2236_vm13, %v2135_v20, %v889_v38  ;;  %883 = vst [vmem:[#allocation2 + $0x10] sm:$0xf] %v882_v24  ;;  %892 = vst.msk [vmem:[#allocation2 + $0x24] sm:$0xf] %vm715_vm11, %v868_v17 }
 0x15d   : > { %801 = vst.msk [vmem:[#allocation2 + $0x18] sm:$0xf] %vm691_vm10, %v781_v26  ;;  %891 = vst [vmem:[#allocation2 + $0x20] sm:$0xf] %v890_v28 }
 0x15e   : > { %v783_v29 = vpop.permute.xlu1 %782 }
 0x15f   : > { %802 = vst.msk [vmem:[#allocation2 + $0x1c] sm:$0xf] %vm691_vm10, %v783_v29  ;;  %v775_v62 = vpop.permute.xlu0 %774  ;;  %v958_v34 = vld [vmem:[#allocation2 + $0x14] sm:$0xf] }
 0x160   : > { %v877_v45 = vld [vmem:[#allocation2 + $0x8] sm:$0xf]  ;;  %888 = vst.msk [vmem:[#allocation2 + $0x1c] sm:$0xf] %vm715_vm11, %v2187_v27 }
 0x161   : > { %v878_v23 = vsel %vm2236_vm13, %v2158_v61, %v877_v45  ;;  %798 = vst.msk [vmem:[#allocation2 + $0xc] sm:$0xf] %vm691_vm10, %v775_v62 }
 0x162   : > { %879 = vst [vmem:[#allocation2 + $0x8] sm:$0xf] %v878_v23  ;;  %880 = vst.msk [vmem:[#allocation2 + $0xc] sm:$0xf] %vm715_vm11, %v2195_v31  ;;  %v934_v20 = vpop.permute.xlu1 %933 }
 0x163   : > { %957 = vst.msk [vmem:[#allocation2 + $0x10] sm:$0xf] %vm741_vm14, %v934_v20  ;;  %v686_v41 = vpop.permute.xlu0 %685  ;;  %v966_v27 = vld [vmem:[#allocation2 + $0x24] sm:$0xf] }
 0x164   : > { %v885_v48 = vld [vmem:[#allocation2 + $0x18] sm:$0xf]  ;;  %692 = vst.msk [vmem:[#allocation2] sm:$0xf] %vm691_vm10, %v686_v41 }
 0x165   : > { %v886_v15 = vsel %vm2236_vm13, %v2171_v1, %v885_v48 }
 0x166   : > { %887 = vst [vmem:[#allocation2 + $0x18] sm:$0xf] %v886_v15  ;;  %v930_v30 = vpop.permute.xlu1 %929 }
 0x167   : > { %v936_v35 = vpop.permute.xlu0 %935  ;;  %953 = vst.msk [vmem:[#allocation2 + $0x8] sm:$0xf] %vm741_vm14, %v930_v30  ;;  %v962_v33 = vld [vmem:[#allocation2 + $0x1c] sm:$0xf] }
 0x168   : > { %v959_v43 = vsel %vm2267_vm0, %v936_v35, %v958_v34 }
 0x169   : > { %960 = vst [vmem:[#allocation2 + $0x14] sm:$0xf] %v959_v43  ;;  %v954_v25 = vld [vmem:[#allocation2 + $0xc] sm:$0xf] }
 0x16a   : > { %v1033_v60 = vld [vmem:[#allocation2 + $0x10] sm:$0x1]  ;;  %v938_v57 = vpop.permute.xlu1 %937 }
 0x16b   : > { %v1034_v49 = vsel %vm2273_vm2, 0, %v1033_v60  ;;  %v718_v1 = vld [vmem:[#allocation2] sm:$0xf]  ;;  %v932_v2 = vpop.permute.xlu0 %931  ;;  %961 = vst.msk [vmem:[#allocation2 + $0x18] sm:$0xf] %vm741_vm14, %v938_v57 }
 0x16c   : > { %1035 = vst [vmem:[#allocation2 + $0x10] sm:$0x1] %v1034_v49  ;;  %v719_v40 = vsel %vm2236_vm13, %v2191_v32, %v718_v1  ;;  %v955_v56 = vsel %vm2267_vm0, %v932_v2, %v954_v25 }
 0x16d   : > { %720 = vst [vmem:[#allocation2] sm:$0xf] %v719_v40  ;;  %956 = vst [vmem:[#allocation2 + $0xc] sm:$0xf] %v955_v56 }
 0x16e   : > { %v1030_v12 = vld [vmem:[#allocation2 + $0x8] sm:$0x1]  ;;  %v688_v54 = vpop.permute.xlu1 %687 }
 0x16f   : > { %v1031_v17 = vsel %vm2273_vm2, 0, %v1030_v12  ;;  %v944_v37 = vpop.permute.xlu0 %943  ;;  %693 = vst.msk [vmem:[#allocation2 + $0x4] sm:$0xf] %vm691_vm10, %v688_v54 }
 0x170   : > { %v1054_v50 = vld [vmem:[#allocation2 + $0x14] sm:$0x8]  ;;  %1032 = vst [vmem:[#allocation2 + $0x8] sm:$0x1] %v1031_v17  ;;  %v967_v32 = vsel %vm2267_vm0, %v944_v37, %v966_v27  ;;  %722 = vst.msk [vmem:[#allocation2 + $0x4] sm:$0xf] %vm715_vm11, %v2208_v52 }
 0x171   : > { %v1055_v22 = vsel %vm2287_vm5, 0, %v1054_v50  ;;  %968 = vst [vmem:[#allocation2 + $0x24] sm:$0xf] %v967_v32  ;;  %v1650_v32 = vld [vmem:[%s2401_s6] ss:$0 sm:$0xff] }
 0x172   : > { %1056 = vst [vmem:[#allocation2 + $0x14] sm:$0x8] %v1055_v22  ;;  %v1036_v31 = vld [vmem:[#allocation2 + $0x18] sm:$0x1]  ;;  %v942_v44 = vpop.permute.xlu1 %941 }
 0x173   : > { %v1037_v46 = vsel %vm2273_vm2, 0, %v1036_v31  ;;  %v940_v47 = vpop.permute.xlu0 %939  ;;  %965 = vst.msk [vmem:[#allocation2 + $0x20] sm:$0xf] %vm741_vm14, %v942_v44 }
 0x174   : > { %v1051_v58 = vld [vmem:[#allocation2 + $0xc] sm:$0x8]  ;;  %1038 = vst [vmem:[#allocation2 + $0x18] sm:$0x1] %v1037_v46  ;;  %v963_v51 = vsel %vm2267_vm0, %v940_v47, %v962_v33 }
 0x175   : > { %v1052_v52 = vsel %vm2287_vm5, 0, %v1051_v58  ;;  %964 = vst [vmem:[#allocation2 + $0x1c] sm:$0xf] %v963_v51 }
 0x176   : > { %1053 = vst [vmem:[#allocation2 + $0xc] sm:$0x8] %v1052_v52  ;;  %v736_v10 = vpop.permute.xlu1 %735 }
 0x177   : > { %v738_v55 = vpop.permute.xlu0 %737  ;;  %v745_v59 = vld [vmem:[#allocation2 + $0x4] sm:$0xf]  ;;  %742 = vst.msk [vmem:[#allocation2] sm:$0xf] %vm741_vm14, %v736_v10 }
 0x178   : > { %v1060_v0 = vld [vmem:[#allocation2 + $0x24] sm:$0x8]  ;;  %v746_v4 = vsel %vm2267_vm0, %v738_v55, %v745_v59 }
 0x179   : > { %v1061_v36 = vsel %vm2287_vm5, 0, %v1060_v0  ;;  %747 = vst [vmem:[#allocation2 + $0x4] sm:$0xf] %v746_v4  ;;  %v1799_v38 = vld [vmem:[#allocation2 + $0x10] sm:$0xff]  }
 0x17a   : > { %1062 = vst [vmem:[#allocation2 + $0x24] sm:$0x8] %v1061_v36  ;;  %v1039_v5 = vld [vmem:[#allocation2 + $0x20] sm:$0x1]  ;;  %v978_v39 = vpop.permute.xlu1 %977 }
 0x17b   : > { %v1040_v13 = vsel %vm2273_vm2, 0, %v1039_v5  ;;  %v976_v14 = vpop.permute.xlu0 %975  ;;  %983 = vst.msk [vmem:[#allocation2 + $0x2c] sm:$0xf] %vm691_vm10, %v978_v39 }
 0x17c   : > { %v1057_v18 = vld [vmem:[#allocation2 + $0x1c] sm:$0x8]  ;;  %1041 = vst [vmem:[#allocation2 + $0x20] sm:$0x1] %v1040_v13  ;;  %982 = vst.msk [vmem:[#allocation2 + $0x28] sm:$0xf] %vm691_vm10, %v976_v14 }
 0x17d   : > { %1005 = vst.msk [vmem:[#allocation2 + $0x2c] sm:$0xf] %vm715_vm11, %v2212_v53  ;;  %v1058_v19 = vsel %vm2287_vm5, 0, %v1057_v18  ;;  %v1798_v16 = vld [vmem:[#allocation2 + $0x8] sm:$0xff]  }
 0x17e   : > { %1059 = vst [vmem:[#allocation2 + $0x1c] sm:$0x8] %v1058_v19  ;;  %v1027_v63 = vld [vmem:[#allocation2] sm:$0x1]  ;;  %1719 = vmatprep.mubr.msk.bf16.mxu0 %vm1105_vm6, %v1798_v16  ;;  %v1016_v20 = vpop.permute.xlu1 %1015  ;;  %v1804_v7 = vld [vmem:[#allocation2 + $0x8] sm:$0xff]  }
 0x17f   : > { %v1028_v24 = vsel %vm2273_vm2, 0, %v1027_v63  ;;  %1720 = vmatmul.mubr.msk.bf16.vlgmr.msra.gmra.mxu0 %vm1105_vm6, %v1799_v38  ;;  %v1018_v29 = vpop.permute.xlu0 %1017 }
 0x180   : > { %v1048_v26 = vld [vmem:[#allocation2 + $0x4] sm:$0x8]  ;;  %1029 = vst [vmem:[#allocation2] sm:$0x1] %v1028_v24  ;;  %1738 = vmatpush3.bf16.msra.mxu0 %v2228_v11  ;;  %v1802_v11 = vld [vmem:[#allocation2 + $0x10] sm:$0xff]  }
 0x181   : > { %v1049_v53 = vsel %vm2287_vm5, 0, %v1048_v26 }
 0x182   : > { %1050 = vst [vmem:[#allocation2 + $0x4] sm:$0x8] %v1049_v53 }
 0x183   : > { %v1002_v28 = vld [vmem:[#allocation2 + $0x28] sm:$0xf]  ;;  %v1801_v41 = vld [vmem:[#allocation2 + $0x20] sm:$0xff]  }
 0x184   : > { %v1022_v45 = vld [vmem:[#allocation2 + $0x2c] sm:$0xf]  ;;  %v1003_v62 = vsel %vm2236_vm13, %v2203_v21, %v1002_v28  ;;  %v1805_v21 = vld [vmem:[#allocation2 + $0x10] sm:$0xff]   ;;  %v1807_v60 = vld [vmem:[#allocation2 + $0x20] sm:$0xff]  }
 0x185   : > { %v1023_v23 = vsel %vm2267_vm0, %v1018_v29, %v1022_v45  ;;  %1004 = vst [vmem:[#allocation2 + $0x28] sm:$0xf] %v1003_v62  ;;  %v1800_v48 = vld [vmem:[#allocation2 + $0x18] sm:$0xff]  }
 0x186   : > { %1024 = vst [vmem:[#allocation2 + $0x2c] sm:$0xf] %v1023_v23  ;;  %1021 = vst.msk [vmem:[#allocation2 + $0x28] sm:$0xf] %vm741_vm14, %v1016_v20  ;;  %1723 = vmatprep.mubr.msk.bf16.mxu0 %vm1105_vm6, %v1800_v48  ;;  %v1806_v43 = vld [vmem:[#allocation2 + $0x18] sm:$0xff]  }
 0x187   : > { %1724 = vmatmul.mubr.msk.bf16.gmra.mxu0 %vm1105_vm6, %v1801_v41  ;;  %v1808_v57 = vld [vmem:[#allocation2 + $0x18] sm:$0xff]  }
 0x188   : > { %1739 = vmatprep.mubr.msk.bf16.mxu0 %vm1105_vm6, %v1802_v11 }
 0x189   : > { %v1803_v15 = vld [vmem:[#allocation2] sm:$0xff]  }
 0x18a   : > { %1729 = vmatprep.mubr.msk.bf16.mxu1 %vm1105_vm6, %v1803_v15 }
 0x18b   : > { %1730 = vmatmul.mubr.msk.bf16.vlgmr.msra.gmra.mxu1 %vm1105_vm6, %v1804_v7 }
 0x18c   : > { %1733 = vmatprep.mubr.msk.bf16.mxu1 %vm1105_vm6, %v1805_v21 }
 0x18d   : > { %v1063_v61 = vld [vmem:[#allocation2 + $0x2c] sm:$0x8]  ;;  %v1042_v34 = vld [vmem:[#allocation2 + $0x28] sm:$0x1] }
 0x18e   : > { %v1064_v30 = vsel %vm2287_vm5, 0, %v1063_v61  ;;  %v1043_v35 = vsel %vm2273_vm2, 0, %v1042_v34 }
 0x18f   : > { %1065 = vst [vmem:[#allocation2 + $0x2c] sm:$0x8] %v1064_v30  ;;  %1044 = vst [vmem:[#allocation2 + $0x28] sm:$0x1] %v1043_v35  ;;  %1740 = vmatmul.mubr.msk.bf16.vlgmr.msra.gmra.mxu0 %vm1105_vm6, %v1806_v43 }
 0x190   : > { %1743 = vmatprep.mubr.msk.bf16.mxu0 %vm1105_vm6, %v1807_v60 }
 0x193   : > { %1734 = vmatmul.mubr.msk.bf16.gmra.mxu1 %vm1105_vm6, %v1808_v57 }
 0x196   : > { %v1809_v49 = vld [vmem:[#allocation2 + $0x28] sm:$0xff]  }
 0x197   : > { %1744 = vmatmul.mubr.msk.bf16.gmra.mxu0 %vm1105_vm6, %v1809_v49 }
 0x23f   : > { %v1721_v1 = vpop.f32.mrf.mxu0 }
 0x241   : > { %v1156_v2 = vpop.f32.mrf.mxu0 }
 0x243   : > { %v1722_v25 = vpop.f32.mrf.mxu0 }
 0x245   : > { %v1159_v40 = vpop.f32.mrf.mxu0 }
 0x247   : > { %v1725_v56 = vpop.f32.mrf.mxu0 }
 0x249   : > { %v1172_v42 = vpop.f32.mrf.mxu0 }
 0x24b   : > { %v1726_v6 = vpop.f32.mrf.mxu0  ;;  %v1731_v12 = vpop.f32.mrf.mxu1 }
 0x24c   : > { %v1265_v54 = vadd.f32 %v1731_v12, %v1721_v1 }
 0x24d   : > { %v1175_v17 = vpop.f32.mrf.mxu0  ;;  %v1256_v27 = vpop.f32.mrf.mxu1 }
 0x24e   : > { %v1257_v37 = vadd.f32 %v1256_v27, %v1156_v2 }
 0x24f   : > { %v1741_v50 = vpop.f32.mrf.mxu0  ;;  %v1732_v22 = vpop.f32.mrf.mxu1 }
 0x250   : > { %v1400_v31 = vadd.f32 %v1741_v50, %v1265_v54  ;;  %v1268_v33 = vadd.f32 %v1732_v22, %v1722_v25  ;;  %v1814_v50 = vld [vmem:[%s1945_s19 + $0x28] sm:$0xff] }
 0x251   : > { %v1367_v44 = vpop.f32.mrf.mxu0  ;;  %v1259_v46 = vpop.f32.mrf.mxu1 }
 0x252   : > { %v1415_v47 = vadd.f32 %v1650_v32, %v1400_v31  ;;  %v1398_v58 = vadd.f32 %v1367_v44, %v1257_v37  ;;  %v1260_v51 = vadd.f32 %v1259_v46, %v1159_v40  ;;  %v1811_v40 = vld [vmem:[%s1945_s19 + $0x30] sm:$0xff] }
 0x253   : > { %v1742_v52 = vpop.f32.mrf.mxu0  ;;  %v1735_v10 = vpop.f32.mrf.mxu1 }
 0x254   : > { %v1423_v55 = vmul.f32 0.1, %v1415_v47  ;;  %v1413_v59 = vadd.f32 %v1650_v32, %v1398_v58  ;;  %v1401_v0 = vadd.f32 %v1742_v52, %v1268_v33  ;;  %v1281_v4 = vadd.f32 %v1735_v10, %v1725_v56 }
 0x255   : > { %v1370_v36 = vpop.f32.mrf.mxu0  ;;  %v1272_v5 = vpop.f32.mrf.mxu1 }
 0x256   : > { %v1431_v39 = vmax.f32 %v1415_v47, %v1423_v55  ;;  %v1421_v13 = vmul.f32 0.1, %v1413_v59  ;;  %v1416_v14 = vadd.f32 %v1650_v32, %v1401_v0  ;;  %v1399_v18 = vadd.f32 %v1370_v36, %v1260_v51 }
 0x257   : > { %v1273_v19 = vadd.f32 %v1272_v5, %v1172_v42  ;;  %v1745_v16 = vpop.f32.mrf.mxu0  ;;  %v1736_v63 = vpop.f32.mrf.mxu1  ;;  %v1812_v42 = vld [vmem:[%s1945_s19 + $0x20] sm:$0xff] }
 0x258   : > { %v1439_v38 = vadd.f32 %v1431_v39, %v1955_v8  ;;  %v1429_v24 = vmax.f32 %v1413_v59, %v1421_v13  ;;  %v1424_v26 = vmul.f32 0.1, %v1416_v14  ;;  %v1414_v53 = vadd.f32 %v1650_v32, %v1399_v18 }
 0x259   : > { %v1404_v28 = vadd.f32 %v1745_v16, %v1281_v4  ;;  %v1284_v29 = vadd.f32 %v1736_v63, %v1726_v6  ;;  %v1383_v45 = vpop.f32.mrf.mxu0  ;;  %v1275_v62 = vpop.f32.mrf.mxu1 }
 0x25a   : > { %1447 = vst.msk [vmem:[%s2354_s12 + $0x10] sm:$0xff] %vm467_vm1, %v1439_v38  ;;  %v1437_v23 = vadd.f32 %v1429_v24, %v1948_v3  ;;  %v1432_v20 = vmax.f32 %v1416_v14, %v1424_v26  ;;  %v1422_v48 = vmul.f32 0.1, %v1414_v53  ;;  %v1402_v41 = vadd.f32 %v1383_v45, %v1273_v19  ;;  %v1810_v3 = vld [vmem:[%s1945_s19 + $0x8] sm:$0xff] }
 0x25b   : > { %v1419_v11 = vadd.f32 %v1650_v32, %v1404_v28  ;;  %v1276_v15 = vadd.f32 %v1275_v62, %v1175_v17  ;;  %v1746_v8 = vpop.f32.mrf.mxu0  ;;  %v1813_v17 = vld [vmem:[%s1945_s19 + $0x38] sm:$0xff] }
 0x25c   : > { %1445 = vst.msk [vmem:[%s2354_s12] sm:$0xff] %vm467_vm1, %v1437_v23  ;;  %v1440_v7 = vadd.f32 %v1432_v20, %v1958_v9  ;;  %v1430_v21 = vmax.f32 %v1414_v53, %v1422_v48  ;;  %v1417_v61 = vadd.f32 %v1650_v32, %v1402_v41  ;;  %v1405_v30 = vadd.f32 %v1746_v8, %v1284_v29 }
 0x25d   : > { %v1427_v34 = vmul.f32 0.1, %v1419_v11  ;;  %v1386_v35 = vpop.f32.mrf.mxu0 }
 0x25e   : > { %1448 = vst.msk [vmem:[%s2354_s12 + $0x18] sm:$0xff] %vm467_vm1, %v1440_v7  ;;  %v1438_v43 = vadd.f32 %v1810_v3, %v1430_v21  ;;  %v1425_v60 = vmul.f32 0.1, %v1417_v61  ;;  %v1420_v57 = vadd.f32 %v1650_v32, %v1405_v30  ;;  %v1403_v49 = vadd.f32 %v1386_v35, %v1276_v15 }
 0x25f   : > { %v1435_v1 = vmax.f32 %v1419_v11, %v1427_v34 }
 0x260   : > { %1446 = vst.msk [vmem:[%s2354_s12 + $0x8] sm:$0xff] %vm467_vm1, %v1438_v43  ;;  %v1433_v9 = vmax.f32 %v1417_v61, %v1425_v60  ;;  %v1428_v2 = vmul.f32 0.1, %v1420_v57  ;;  %v1418_v25 = vadd.f32 %v1650_v32, %v1403_v49 }
 0x261   : > { %v1443_v56 = vadd.f32 %v1811_v40, %v1435_v1 }
 0x262   : > { %v1441_v6 = vadd.f32 %v1812_v42, %v1433_v9  ;;  %v1436_v12 = vmax.f32 %v1420_v57, %v1428_v2  ;;  %v1426_v54 = vmul.f32 0.1, %v1418_v25 }
 0x263   : > { %1451 = vst.msk [vmem:[%s2354_s12 + $0x30] sm:$0xff] %vm467_vm1, %v1443_v56 }
 0x264   : > { %1449 = vst.msk [vmem:[%s2354_s12 + $0x20] sm:$0xff] %vm467_vm1, %v1441_v6  ;;  %v1444_v27 = vadd.f32 %v1813_v17, %v1436_v12  ;;  %v1434_v37 = vmax.f32 %v1418_v25, %v1426_v54 }
 0x266   : > { %1452 = vst.msk [vmem:[%s2354_s12 + $0x38] sm:$0xff] %vm467_vm1, %v1444_v27  ;;  %v1442_v22 = vadd.f32 %v1814_v50, %v1434_v37 }
 0x268   : > { %1450 = vst.msk [vmem:[%s2354_s12 + $0x28] sm:$0xff] %vm467_vm1, %v1442_v22 }
 0x269 PF: > { %s17_s28 = sadd.s32 1, %s1853_s28   ;;  %s2415_s24 = smov %s1845_s26 }
 0x26a   : > { %p14_p13 = scmp.ge.s32.totalorder %s17_s28, 10   ;;  %s2416_s25 = smov %s1849_s27 }
 0x26b   : > { %s2417_s26 = smov %s2420_s29  ;;  %s2418_s27 = smov %s2424_s30 }
 0x26c   :  { %16 = sbr.rel (!%p14_p13) target bundleno = 3 (0x3), region = 89 }

</bundles_post_ra>
